<compile_context>
chip_gen: v7x
topology: tpu7x:2x2x1
jax: 0.10.0
libtpu: 0.0.40
codegen_flags: <defaults>
</compile_context>

<pallas_src>
import functools

import jax
import jax.numpy as jnp
from jax.experimental import pallas as pl
from jax.experimental.pallas import tpu as pltpu

OUT_DIM = 97        # nn.Linear(dim, 97)
MAX_TB = 1024       # batch-tile cap (v6e/v7x friendly); further capped by VMEM below


def _round_up(n, m):
    return ((n + m - 1) // m) * m


def linear_kernel(x_ref, w_ref, b_ref, o_ref):
    # x_ref: (tb, D), w_ref: (D, 97), b_ref: (1, 97), o_ref: (tb, 97)
    acc = jnp.dot(x_ref[...], w_ref[...], preferred_element_type=jnp.float32)
    o_ref[...] = (acc + b_ref[...]).astype(o_ref.dtype)


def prepare_params(weight, bias):
    """One-time parameter prep (off the hot path).

    weight: (97, D) float32 (PyTorch convention) -> (D, 97)
    bias:   (97,)   float32                      -> (1, 97)
    """
    out_dim, _ = weight.shape
    assert out_dim == OUT_DIM
    return weight.T, bias.reshape(1, OUT_DIM)


def _select_batch_tile(B, D):
    """Pick the batch tile.

    (a) fits a ~12 MiB VMEM budget (safe under v5e's 16 MiB default scoped
        VMEM; trivially under v6e/v7x's 32 MiB), scaling with D,
    (b) gives >= 2 grid steps whenever B allows (both v7x TCs get work),
    (c) never makes a block exceed the array extent, and the only padded work
        is the ragged tail of the final tile.
    """
    budget = 12 * (1 << 20)
    # double-buffered x (tb*D*4) + out (lane-padded to 128 in VMEM, tb*128*4)
    # + double-buffered grid-invariant weight (D*128*4).
    cap = (budget - 2 * D * 128 * 4) // (8 * D + 8 * 128)
    cap = max(8, (cap // 8) * 8)
    max_tb = min(MAX_TB, cap)

    if B <= 8:
        return B                      # single full-extent block
    min_steps = 2 if B >= 16 else 1   # v7x: keep both TensorCores busy
    nt = max(min_steps, pl.cdiv(B, max_tb))
    tb = _round_up(pl.cdiv(B, nt), 8)
    tb = min(tb, (B // 8) * 8)        # block never exceeds the array extent
    return max(8, tb)


@functools.partial(jax.jit, static_argnames=("out_dtype",))
def one_layer_forward(x, w_t, b2, *, out_dtype=jnp.float32):
    """y = x @ weight.T + bias  (same semantics as torch nn.Linear forward).

    x:   (B, D) float32
    w_t: (D, 97) pre-transposed weight (from prepare_params)
    b2:  (1, 97) bias                  (from prepare_params)
    out_dtype: jnp.bfloat16 halves the dominant output HBM traffic when the
               accuracy budget allows (accumulation stays f32 in-kernel).
    returns (B, 97) in out_dtype
    """
    B, D = x.shape
    tb = _select_batch_tile(B, D)
    grid = (pl.cdiv(B, tb),)

    cost = pl.CostEstimate(
        flops=2 * B * D * OUT_DIM,
        transcendentals=0,
        bytes_accessed=(B * D * x.dtype.itemsize            # x
                        + D * OUT_DIM * w_t.dtype.itemsize  # weight
                        + OUT_DIM * 4                        # bias
                        + B * OUT_DIM * jnp.dtype(out_dtype).itemsize),  # out
    )

    # NOTE: for tiny single-step problems (like the demo below) a plain XLA
    # dot beats the fixed pallas_call launch/DMA latency; route only large-B
    # batches through this kernel in production.
    return pl.pallas_call(
        linear_kernel,
        out_shape=jax.ShapeDtypeStruct((B, OUT_DIM), out_dtype),
        grid_spec=pltpu.PrefetchScalarGridSpec(
            num_scalar_prefetch=0,
            grid=grid,
            in_specs=[
                pl.BlockSpec((tb, D), lambda i: (i, 0)),
                pl.BlockSpec((D, OUT_DIM), lambda i: (0, 0)),  # grid-invariant
                pl.BlockSpec((1, OUT_DIM), lambda i: (0, 0)),  # grid-invariant
            ],
            out_specs=pl.BlockSpec((tb, OUT_DIM), lambda i: (i, 0)),
        ),
        compiler_params=pltpu.CompilerParams(
            dimension_semantics=("parallel",),
        ),
        cost_estimate=cost,
    )(x, w_t, b2)


if __name__ == "__main__":
    # Small shapes consistent with the module: dim=32, batch=8
    B, D = 8, 32
    key = jax.random.PRNGKey(0)
    kx, kw, kb = jax.random.split(key, 3)

    # Deterministic synthetic parameters (PyTorch-style uniform init bounds)
    bound = 1.0 / (D ** 0.5)
    weight = jax.random.uniform(kw, (OUT_DIM, D), jnp.float32, -bound, bound)
    bias = jax.random.uniform(kb, (OUT_DIM,), jnp.float32, -bound, bound)
    x = jax.random.normal(kx, (B, D), jnp.float32)

    # One-time parameter preparation (transpose) off the hot path.
    w_t, b2 = prepare_params(weight, bias)

    y = one_layer_forward(x, w_t, b2)
    y = jax.block_until_ready(y)

    # Sanity check vs plain-JAX reference
    y_ref = x @ weight.T + bias
    assert y.shape == (B, OUT_DIM)
    assert jnp.allclose(y, y_ref, atol=1e-5, rtol=1e-5)

    print("KERNEL_OK")
</pallas_src>

<mosaic_0001>
module attributes {stable_mosaic.version = 11 : i64} {
  func.func @linear_kernel(%arg0: i32, %arg1: memref<8x32xf32, #tpu.memory_space<vmem>>, %arg2: memref<32x97xf32, #tpu.memory_space<vmem>>, %arg3: memref<1x97xf32, #tpu.memory_space<vmem>>, %arg4: memref<8x97xf32, #tpu.memory_space<vmem>>) attributes {dimension_semantics = [#tpu.dimension_semantics<parallel>], iteration_bounds = array<i64: 1>, scalar_prefetch = 0 : i64, scratch_operands = 0 : i64, tpu.core_type = #tpu.core_type<tc>, window_params = [{transform_indices = @transform_0, window_bounds = array<i64: 8, 32>}, {pipeline_mode = #tpu.pipeline_mode<synchronous>, transform_indices = @transform_1, window_bounds = array<i64: 32, 97>}, {pipeline_mode = #tpu.pipeline_mode<synchronous>, transform_indices = @transform_2, window_bounds = array<i64: 1, 97>}, {transform_indices = @transform_3, window_bounds = array<i64: 8, 97>}]} {
    %c0 = arith.constant 0 : index
    %c0_0 = arith.constant 0 : index
    %0 = vector.load %arg1[%c0, %c0_0] : memref<8x32xf32, #tpu.memory_space<vmem>>, vector<8x32xf32>
    %c0_1 = arith.constant 0 : index
    %c0_2 = arith.constant 0 : index
    %1 = vector.load %arg2[%c0_1, %c0_2] : memref<32x97xf32, #tpu.memory_space<vmem>>, vector<32x97xf32>
    %cst = arith.constant dense<0.000000e+00> : vector<8x97xf32>
    %2 = tpu.matmul %0, %1, %cst {dimension_numbers = #tpu.dot_dimension_numbers<[1], [0], [0], [1], [0, 0, 1, 1], [], []>} : vector<8x32xf32>, vector<32x97xf32>, vector<8x97xf32> -> vector<8x97xf32>
    %c0_3 = arith.constant 0 : index
    %c0_4 = arith.constant 0 : index
    %3 = vector.load %arg3[%c0_3, %c0_4] : memref<1x97xf32, #tpu.memory_space<vmem>>, vector<1x97xf32>
    %4 = vector.broadcast %3 : vector<1x97xf32> to vector<8x97xf32>
    %5 = arith.addf %2, %4 : vector<8x97xf32>
    %c0_5 = arith.constant 0 : index
    %c0_6 = arith.constant 0 : index
    %6 = vector.load %arg4[%c0_5, %c0_6] : memref<8x97xf32, #tpu.memory_space<vmem>>, vector<8x97xf32>
    tpu.vector_store %arg4[%c0_5, %c0_6], %5 {strides = array<i32>} : memref<8x97xf32, #tpu.memory_space<vmem>>, vector<8x97xf32>,
    return
  }
  func.func @transform_0(%arg0: i32) -> (i32, i32) {
    %c0_i32 = arith.constant 0 : i32
    %c0_i32_0 = arith.constant 0 : i32
    return %arg0, %c0_i32 : i32, i32
  }
  func.func @transform_1(%arg0: i32) -> (i32, i32) {
    %c0_i32 = arith.constant 0 : i32
    %c0_i32_0 = arith.constant 0 : i32
    %c0_i32_1 = arith.constant 0 : i32
    return %c0_i32, %c0_i32_0 : i32, i32
  }
  func.func @transform_2(%arg0: i32) -> (i32, i32) {
    %c0_i32 = arith.constant 0 : i32
    %c0_i32_0 = arith.constant 0 : i32
    %c0_i32_1 = arith.constant 0 : i32
    return %c0_i32, %c0_i32_0 : i32, i32
  }
  func.func @transform_3(%arg0: i32) -> (i32, i32) {
    %c0_i32 = arith.constant 0 : i32
    %c0_i32_0 = arith.constant 0 : i32
    return %arg0, %c0_i32 : i32, i32
  }
}

</mosaic_0001>

<bundles_post_ra>
// kernel: one_layer_forward.1
= control target key start
LH: loop header
LB: loop body
LE: loop exit
PB: predicated region body
PF: predicated region fallthrough
CT: control target
= control target key end

     0   :  { %8 = vsyncpa [#allocation3], 0  ;;  %s323_s0 = inlined_call_operand.hbm [shape: f32[8,32], index: 0, kind: input, shape index: {}]   ;;  %s324_s1 = inlined_call_operand.hbm [shape: f32[32,97], index: 1, kind: input, shape index: {}]   ;;  %s325_s2 = inlined_call_operand.vmem [shape: f32[1,97], index: 2, kind: input, shape index: {}]   ;;  %s326_s3 = inlined_call_operand.hbm [shape: f32[8,97], index: 3, kind: output, shape index: {}]  }
   0x1   :  { %9 = vsyncpa [#allocation6], 0 }
   0x2   :  { %10 = vsyncpa [#allocation4], 0  ;;  %s249_s12 = smov [#allocation2]   ;;  %s250_s14 = smov [#allocation5]  }
   0x3   :  { %s17_s13 = sshll.u32 %s249_s12, 4  ;;  %s26_s15 = sshll.u32 %s250_s14, 4  ;;  %s18_s13 = int_to_ptr.vmem [resolvable:$true] %s17_s13  ;;  %s277_s15 = int_to_ptr.vmem [resolvable:$true] %s26_s15 }
   0x4   :  { %s177_s18 = scalar_lea.hbm %s323_s0, 128 }
   0x5   :  { %p178_p0 = scmp.ne.s32.totalorder %s323_s0, %s177_s18  ;;  %p181_p1 = scmp.lt.u32.totalorder %s177_s18, %s323_s0 }
   0x7   :  { %p183_p2 = pnand %p181_p1, %p178_p0 }
   0x9   :  { %186 = shalt.err (!%p183_p2)
}
   0xa   :  { %s187_s23 = scalar_lea.vmem %s18_s13, 128  ;;  %p192_p4 = scmp.lt.s32.totalorder %s18_s13, %s18_s13 }
   0xb   :  { %p188_p3 = scmp.ne.s32.totalorder %s18_s13, %s187_s23  ;;  %p193_p5 = scmp.lt.s32.totalorder %s187_s23, %s187_s23 }
   0xd   :  { %p194_p6 = por %p193_p5, %p192_p4 }
   0xf   :  { %p195_p7 = pnand %p194_p6, %p188_p3 }
  0x11   :  { %198 = shalt.err (!%p195_p7)
}
  0x12   :  { %20 = dma.hbm_to_vmem [thread:$0]  %s323_s0, 128, %s18_s13, [#allocation3]  }
  0x13   :  { %s199_s28 = scalar_lea.hbm %s324_s1, 512 }
  0x14   :  { %p200_p8 = scmp.ne.s32.totalorder %s324_s1, %s199_s28  ;;  %p203_p9 = scmp.lt.u32.totalorder %s199_s28, %s324_s1 }
  0x16   :  { %p205_p10 = pnand %p203_p9, %p200_p8 }
  0x18   :  { %208 = shalt.err (!%p205_p10)
}
  0x19   :  { %s209_s6 = scalar_lea.vmem %s277_s15, 512  ;;  %p214_p12 = scmp.lt.s32.totalorder %s277_s15, %s277_s15 }
  0x1a   :  { %p210_p11 = scmp.ne.s32.totalorder %s277_s15, %s209_s6  ;;  %p215_p13 = scmp.lt.s32.totalorder %s209_s6, %s209_s6 }
  0x1c   :  { %p216_p0 = por %p215_p13, %p214_p12 }
  0x1e   :  { %p217_p1 = pnand %p216_p0, %p210_p11 }
  0x20   :  { %220 = shalt.err (!%p217_p1)
}
  0x21   :  { %s251_s0 = smov 128   ;;  %s252_s7 = smov 8  }
  0x22   :  { %32 = dma.hbm_to_vmem [thread:$0]  %s324_s1, 512, %s277_s15, [#allocation6], %s251_s0, %s251_s0, %s252_s7  }
  0x23   :  { %243 = dma.done.wait [#allocation3], 128  }
  0x24   :  { %244 = vsyncadd [#allocation3], 4294967168 }
  0x25   :  { %245 = dma.done.wait [#allocation6], 512  }
  0x26   :  { %246 = vsyncadd [#allocation6], 4294966784  ;;  %v253_v0 = vmov 0.0|0.0   ;;  %vm254_vm0 = vmmov 0   ;;  %v255_v1 = vmov 0.0   ;;  %v42_v2 = vld [vmem:[#allocation5] sm:$0xff] }
  0x27   :  { %163 = vmatprep.subr.bf16.mxu0 %v253_v0  ;;  %160 = vmatprep.mubr.msk.f32.mxu0 %vm254_vm0, %v255_v1  ;;  %v43_v3 = vld [vmem:[#allocation5 + $0x8] sm:$0xff]  ;;  %v44_v4 = vld [vmem:[#allocation5 + $0x10] sm:$0xff]  ;;  %v45_v6 = vld [vmem:[#allocation5 + $0x18] sm:$0xff]  ;;  %vm53_vm1 = vcmask 261120   ;;  %s256_s11 = smov [#allocation7]   ;;  %vm127_vm2 = vcmask 793600  }
  0x28   :  { %v164_v5 = vpack.c.bf16 %v43_v3, %v42_v2  ;;  %v167_v7 = vpack.c.bf16 %v45_v6, %v44_v4  ;;  %v41_v8 = vld [vmem:[#allocation2] sm:$0xff]  ;;  %s135_s12 = sshll.u32 %s256_s11, 4  ;;  %s136_s12 = int_to_ptr.vmem [resolvable:$true] %s135_s12 }
  0x29   :  { %v145_v9 = vld [vmem:[%s325_s2] ss:$0 sm:$0xff]  ;;  %s221_s13 = scalar_lea.vmem %s136_s12, 128  ;;  %p226_p3 = scmp.lt.s32.totalorder %s136_s12, %s136_s12 }
  0x2a   :  { %165 = vmatpush3.bf16.msra.mxu0 %v164_v5  ;;  %p222_p2 = scmp.ne.s32.totalorder %s136_s12, %s221_s13  ;;  %p227_p4 = scmp.lt.s32.totalorder %s221_s13, %s221_s13 }
  0x2b   :  { %166 = vmatprep.subr.bf16.mxu0 %v253_v0 }
  0x2c   :  { %p228_p5 = por %p227_p4, %p226_p3 }
  0x2e   :  { %168 = vmatpush3.bf16.msra.mxu0 %v167_v7  ;;  %p229_p6 = pnand %p228_p5, %p222_p2 }
  0x31   :  { %161 = vmatmul.mubr.msk.f32.vlgmr.msra.gmra.mrb[0].mxu0 %vm53_vm1, %v41_v8 }
 0x104   :  { %v123_v10 = vpop.f32.mrb[0].mxu0 }
 0x105   :  { %v124_v11 = vadd.f32 %v145_v9, %v123_v10  ;;  %v162_v12 = vpop.f32.mrb[1].mxu0 }
 0x107   :  { %128 = vst.msk [vmem:[#allocation7] sm:$0xff] %vm127_vm2, %v124_v11 }
 0x108   :  { %232 = shalt.err (!%p229_p6)
}
 0x109   :  { %s233_s16 = scalar_lea.hbm %s326_s3, 128 }
 0x10a   :  { %p234_p7 = scmp.ne.s32.totalorder %s326_s3, %s233_s16  ;;  %p237_p8 = scmp.lt.u32.totalorder %s233_s16, %s326_s3 }
 0x10c   :  { %p239_p9 = pnand %p237_p8, %p234_p7 }
 0x10e   :  { %242 = shalt.err (!%p239_p9)
}
 0x10f   :  { %138 = dma.vmem_to_hbm [thread:$0]  %s136_s12, 128, %s326_s3, [#allocation4]  }
 0x110   :  { %247 = dma.done.wait [#allocation4], 128  }
 0x111   :  { %248 = vsyncadd [#allocation4], 4294967168 }
 0x112   :  { %142 = vsyncpa [#allocation3], 1 }
 0x113   :  { %143 = vsyncpa [#allocation6], 1 }
 0x114   :  { %144 = vsyncpa [#allocation4], 1 }

</bundles_post_ra>
